<compile_context>
chip_gen: v5e
topology: v5e:2x2
jax: 0.10.0
libtpu: 0.0.40
codegen_flags: <defaults>
</compile_context>

<pallas_src>
import jax
import jax.numpy as jnp
from jax.experimental import pallas as pl
from jax.experimental.pallas import tpu as pltpu


def _round_up(x, m):
    return ((x + m - 1) // m) * m


def _sublane(dtype):
    # Minimum second-to-last tile multiple per dtype: f32 -> 8, bf16 -> 16,
    # int8/fp8 -> 32.
    return max(8, 32 // jnp.dtype(dtype).itemsize)


def _patch_embed_kernel(x_ref, w_ref, b_ref, o_ref):
    # x_ref: (tm, K)  patch tile          (compute dtype, e.g. bf16)
    # w_ref: (K, D)   projection weight   (resident across the grid)
    # b_ref: (1, D)   bias, f32           (resident across the grid)
    # o_ref: (tm, D)  output tile         (caller dtype; downcast happens here)
    acc = jnp.dot(x_ref[...], w_ref[...], preferred_element_type=jnp.float32)
    o_ref[...] = (acc + b_ref[...]).astype(o_ref.dtype)


def patch_embed_matmul(patches, weight, bias2d, *, out_dtype, tm=None):
    """patches: (M, K); weight: (K, D); bias2d: (1, D) f32. Returns (M, D)."""
    M, K = patches.shape
    Kw, D = weight.shape
    assert Kw == K

    in_size = jnp.dtype(patches.dtype).itemsize
    out_size = jnp.dtype(out_dtype).itemsize
    w_size = jnp.dtype(weight.dtype).itemsize
    b_size = jnp.dtype(bias2d.dtype).itemsize

    # Sublane multiple must satisfy the strictest dtype on the tiled row axis.
    sub = max(_sublane(patches.dtype), _sublane(out_dtype))

    # Big tiles get close to the HBM roofline (256 -> ~63%, 512+ -> ~85%);
    # bf16 halves bytes/row so it can go bigger.  Shrink so the grid has at
    # least two steps (v7x has 2 TensorCores and M is the only parallel axis).
    if tm is None:
        tm = 1024 if in_size <= 2 else 512
    tm_eff = min(_round_up(tm, sub), _round_up(pl.cdiv(M, 2), sub))
    Mp = _round_up(M, tm_eff)
    if Mp != M:
        patches = jnp.pad(patches, ((0, Mp - M), (0, 0)))

    # Rough VMEM need: double-buffered in/out tiles + weight/bias buffers.
    vmem_est = (2 * tm_eff * K * in_size + 2 * tm_eff * D * out_size
                + 2 * K * D * w_size + 2 * D * b_size)
    compiler_kwargs = dict(dimension_semantics=("parallel",))
    try:
        vmem_cap = int(pltpu.get_tpu_info().vmem_capacity_bytes)
    except Exception:  # pragma: no cover - conservative fallback (v7x size)
        vmem_cap = 64 << 20
    if vmem_est > (8 << 20):
        # Raise the scoped-VMEM limit only when the default could be tight;
        # never exceed 50% of this generation's physical VMEM.
        compiler_kwargs["vmem_limit_bytes"] = int(
            min(max(vmem_est * 3 // 2, vmem_est + (2 << 20)), vmem_cap // 2))

    cost = pl.CostEstimate(
        flops=2 * M * K * D,
        transcendentals=0,
        bytes_accessed=(M * K * in_size + K * D * w_size + D * b_size
                        + M * D * out_size),
    )

    out = pl.pallas_call(
        _patch_embed_kernel,
        out_shape=jax.ShapeDtypeStruct((Mp, D), out_dtype),
        grid_spec=pltpu.PrefetchScalarGridSpec(
            num_scalar_prefetch=0,
            grid=(Mp // tm_eff,),
            in_specs=[
                pl.BlockSpec((tm_eff, K), lambda i: (i, 0)),
                pl.BlockSpec((K, D), lambda i: (0, 0)),   # weight: resident
                pl.BlockSpec((1, D), lambda i: (0, 0)),   # bias:   resident
            ],
            out_specs=pl.BlockSpec((tm_eff, D), lambda i: (i, 0)),
        ),
        compiler_params=pltpu.CompilerParams(**compiler_kwargs),
        cost_estimate=cost,
    )(patches, weight, bias2d)

    return out[:M] if Mp != M else out


class PatchEmbedPallas:
    """JAX/Pallas equivalent of the PyTorch PatchEmbed module (NCHW input)."""

    def __init__(self, img_size=224, patch_size=16, in_chans=3, embed_dim=768,
                 bias=True, key=None, compute_dtype=jnp.bfloat16, tm=None):
        self.img_size = (img_size, img_size)
        self.patch_size = (patch_size, patch_size)
        self.num_patches = (img_size // patch_size) * (img_size // patch_size)
        self.in_chans = in_chans
        self.embed_dim = embed_dim
        self.compute_dtype = compute_dtype
        self.tm = tm

        key = jax.random.PRNGKey(0) if key is None else key
        kw, kb = jax.random.split(key)
        # Conv2d weight layout (out_chans, in_chans, ph, pw), like PyTorch.
        fan_in = in_chans * patch_size * patch_size
        bound = 1.0 / (fan_in ** 0.5)
        self.proj_weight = jax.random.uniform(
            kw, (embed_dim, in_chans, patch_size, patch_size),
            dtype=jnp.float32, minval=-bound, maxval=bound)
        if bias:
            self.proj_bias = jax.random.uniform(
                kb, (embed_dim,), dtype=jnp.float32, minval=-bound, maxval=bound)
        else:
            self.proj_bias = jnp.zeros((embed_dim,), dtype=jnp.float32)

        # ---- kernel-ready parameters, computed ONCE (hoisted from __call__) --
        # (D, C, ph, pw) -> (C*ph*pw, D); K ordering matches the im2col below.
        K = in_chans * patch_size * patch_size
        w = self.proj_weight.transpose(1, 2, 3, 0).reshape(K, embed_dim)
        self._w = w.astype(compute_dtype)
        self._b = self.proj_bias.reshape(1, embed_dim).astype(jnp.float32)

    def __call__(self, x):
        # x: (B, C, H, W), matching the PyTorch module.
        B, C, H, W = x.shape
        ph, pw = self.patch_size
        Hp, Wp = H // ph, W // pw

        # im2col: pure layout glue (one fused XLA transpose+cast pass).
        # TODO(synk): fold this gather into the kernel's BlockSpec index_map so
        # the patch matrix is never materialized in HBM.
        patches = x.reshape(B, C, Hp, ph, Wp, pw).transpose(0, 2, 4, 1, 3, 5)
        patches = patches.reshape(B * Hp * Wp, C * ph * pw)
        patches = patches.astype(self.compute_dtype)

        # Hot path: projection matmul + bias in Pallas; writes x.dtype directly
        # and never pads the embed dim -> no post-kernel strip/cast passes.
        out = patch_embed_matmul(patches, self._w, self._b,
                                 out_dtype=x.dtype, tm=self.tm)
        # (B*N, D) -> (B, N, D)  == conv -> flatten(2) -> transpose(1, 2)
        return out.reshape(B, Hp * Wp, self.embed_dim)


def _reference_patch_embed(x, weight, bias, patch_size):
    """Pure-JAX reference using a strided convolution (matches nn.Conv2d)."""
    y = jax.lax.conv_general_dilated(
        x, weight,
        window_strides=(patch_size, patch_size),
        padding="VALID",
        dimension_numbers=("NCHW", "OIHW", "NCHW"),
    )
    y = y + bias.reshape(1, -1, 1, 1)
    B, D, Hp, Wp = y.shape
    return y.reshape(B, D, Hp * Wp).transpose(0, 2, 1)


if __name__ == "__main__":
    B, C, H, W = 2, 4, 16, 16
    patch = 4
    embed_dim = 32

    key = jax.random.PRNGKey(0)
    kx, kp = jax.random.split(key)
    x = jax.random.normal(kx, (B, C, H, W), dtype=jnp.float32)

    # f32 compute path (tight tolerance vs. the f32 conv reference).
    mod_f32 = PatchEmbedPallas(img_size=H, patch_size=patch, in_chans=C,
                               embed_dim=embed_dim, bias=True, key=kp,
                               compute_dtype=jnp.float32)
    out_f32 = jax.block_until_ready(jax.jit(mod_f32.__call__)(x))
    ref = _reference_patch_embed(x, mod_f32.proj_weight, mod_f32.proj_bias, patch)
    assert out_f32.shape == (B, mod_f32.num_patches, embed_dim), out_f32.shape
    assert out_f32.dtype == x.dtype, out_f32.dtype
    assert jnp.allclose(out_f32, ref, atol=1e-4, rtol=1e-4), "f32 mismatch vs reference"

    # bf16 compute path (default): inputs/weights round-trip bf16, f32 accum;
    # looser tolerance vs. the f32 reference.
    mod_bf16 = PatchEmbedPallas(img_size=H, patch_size=patch, in_chans=C,
                                embed_dim=embed_dim, bias=True, key=kp)
    out_bf16 = jax.block_until_ready(jax.jit(mod_bf16.__call__)(x))
    assert out_bf16.shape == (B, mod_bf16.num_patches, embed_dim), out_bf16.shape
    assert out_bf16.dtype == x.dtype, out_bf16.dtype
    assert jnp.allclose(out_bf16, ref, atol=5e-2, rtol=5e-2), "bf16 mismatch vs reference"

    print("KERNEL_OK")
</pallas_src>

<mosaic_0001>
module attributes {stable_mosaic.version = 11 : i64} {
  func.func @_patch_embed_kernel(%arg0: i32, %arg1: memref<16x64xf32, #tpu.memory_space<vmem>>, %arg2: memref<64x32xf32, #tpu.memory_space<vmem>>, %arg3: memref<1x32xf32, #tpu.memory_space<vmem>>, %arg4: memref<16x32xf32, #tpu.memory_space<vmem>>) attributes {dimension_semantics = [#tpu.dimension_semantics<parallel>], iteration_bounds = array<i64: 2>, scalar_prefetch = 0 : i64, scratch_operands = 0 : i64, tpu.core_type = #tpu.core_type<tc>, window_params = [{transform_indices = @transform_0, window_bounds = array<i64: 16, 64>}, {pipeline_mode = #tpu.pipeline_mode<synchronous>, transform_indices = @transform_1, window_bounds = array<i64: 64, 32>}, {pipeline_mode = #tpu.pipeline_mode<synchronous>, transform_indices = @transform_2, window_bounds = array<i64: 1, 32>}, {transform_indices = @transform_3, window_bounds = array<i64: 16, 32>}]} {
    %c0 = arith.constant 0 : index
    %c0_0 = arith.constant 0 : index
    %0 = vector.load %arg1[%c0, %c0_0] : memref<16x64xf32, #tpu.memory_space<vmem>>, vector<16x64xf32>
    %c0_1 = arith.constant 0 : index
    %c0_2 = arith.constant 0 : index
    %1 = vector.load %arg2[%c0_1, %c0_2] : memref<64x32xf32, #tpu.memory_space<vmem>>, vector<64x32xf32>
    %cst = arith.constant dense<0.000000e+00> : vector<16x32xf32>
    %2 = tpu.matmul %0, %1, %cst {dimension_numbers = #tpu.dot_dimension_numbers<[1], [0], [0], [1], [0, 0, 1, 1], [], []>} : vector<16x64xf32>, vector<64x32xf32>, vector<16x32xf32> -> vector<16x32xf32>
    %c0_3 = arith.constant 0 : index
    %c0_4 = arith.constant 0 : index
    %3 = vector.load %arg3[%c0_3, %c0_4] : memref<1x32xf32, #tpu.memory_space<vmem>>, vector<1x32xf32>
    %4 = vector.broadcast %3 : vector<1x32xf32> to vector<16x32xf32>
    %5 = arith.addf %2, %4 : vector<16x32xf32>
    %c0_5 = arith.constant 0 : index
    %c0_6 = arith.constant 0 : index
    %6 = vector.load %arg4[%c0_5, %c0_6] : memref<16x32xf32, #tpu.memory_space<vmem>>, vector<16x32xf32>
    tpu.vector_store %arg4[%c0_5, %c0_6], %5 {strides = array<i32>} : memref<16x32xf32, #tpu.memory_space<vmem>>, vector<16x32xf32>,
    return
  }
  func.func @transform_0(%arg0: i32) -> (i32, i32) {
    %c0_i32 = arith.constant 0 : i32
    %c0_i32_0 = arith.constant 0 : i32
    return %arg0, %c0_i32 : i32, i32
  }
  func.func @transform_1(%arg0: i32) -> (i32, i32) {
    %c0_i32 = arith.constant 0 : i32
    %c0_i32_0 = arith.constant 0 : i32
    %c0_i32_1 = arith.constant 0 : i32
    return %c0_i32, %c0_i32_0 : i32, i32
  }
  func.func @transform_2(%arg0: i32) -> (i32, i32) {
    %c0_i32 = arith.constant 0 : i32
    %c0_i32_0 = arith.constant 0 : i32
    %c0_i32_1 = arith.constant 0 : i32
    return %c0_i32, %c0_i32_0 : i32, i32
  }
  func.func @transform_3(%arg0: i32) -> (i32, i32) {
    %c0_i32 = arith.constant 0 : i32
    %c0_i32_0 = arith.constant 0 : i32
    return %arg0, %c0_i32 : i32, i32
  }
}

</mosaic_0001>

<bundles_post_ra>
// kernel: a_call__.1
= control target key start
LH: loop header
LB: loop body
LE: loop exit
PB: predicated region body
PF: predicated region fallthrough
CT: control target
= control target key end

     0   :  { %8 = vsyncpa [#allocation3], 0  ;;  %s559_s0 = inlined_call_operand.vmem [shape: f32[32,64], index: 0, kind: input, shape index: {}]   ;;  %s560_s1 = inlined_call_operand.vmem [shape: f32[64,32], index: 1, kind: input, shape index: {}]   ;;  %s561_s2 = inlined_call_operand.vmem [shape: f32[1,32], index: 2, kind: input, shape index: {}]   ;;  %s562_s3 = inlined_call_operand.hbm [shape: f32[32,32], index: 3, kind: output, shape index: {}]  }
   0x1   :  { %10 = vsyncpa [#allocation3 + $0x1], 0  ;;  %s448_s12 = smov 0   ;;  %s450_s13 = smov 0  }
   0x2   :  { %s452_s14 = smov 0   ;;  %s454_s15 = smov 0  }
   0x3 LB: > { %s469_s16 = sadd.s32 4294967295, %s424_s15   ;;  %s297_s17 = sadd.s32 4294967294, %s424_s15   ;;  %s424_s15 = sphi %s454_s15, %s568_s15   ;;  %s420_s14 = sphi %s452_s14, %s567_s14   ;;  %s416_s13 = sphi %s450_s13, %s566_s13   ;;  %s412_s12 = sphi %s448_s12, %s565_s12  }
   0x4   : > { %s473_s18 = sadd.s32 1, %s424_s15   ;;  %s91_s19 = sadd.s32 1, %s420_s14 }
   0x5   : > { %s88_s20 = ssub.s32 %s424_s15, %s473_s18  ;;  %p101_p0 = scmp.ne.s32.totalorder %s420_s14, %s416_s13 }
   0x6   : > { %p89_p1 = scmp.eq.s32.totalorder %s88_s20, 0  ;;  %p102_p2 = scmp.eq.s32.totalorder %s469_s16, 1 }
   0x7   : > { %p107_p3 = scmp.ne.s32.totalorder %s416_s13, %s412_s12  ;;  %p108_p4 = scmp.eq.s32.totalorder %s297_s17, 1 }
   0x8   : > { %s484_s21 = scalar_select %p89_p1, %s420_s14, %s91_s19  }
   0x9   : > { %p486_p5 = por %p102_p2, %p101_p0  ;;  %p490_p6 = por %p108_p4, %p107_p3 }
   0xa   : > { %p300_p7 = scmp.ge.s32.totalorder %s424_s15, 1  ;;  %p141_p8 = scmp.lt.s32.totalorder %s424_s15, 3 }
   0xc   : > { %p142_p9 = pnand %p300_p7, %p141_p8 }
   0xd   : > { %s302_s28 = sshll.u32 (!%p142_p9), %s469_s16, 1  ;;  %s162_s27 = sand.u32 (!%p142_p9), 1, %s416_s13  }
   0xe   : > { %145 = sbr.rel (%p142_p9) target bundleno = 168 (0xa8), region = 32  ;;  %p166_p10 = scmp.lt.s32.totalorder (!%p142_p9), %s302_s28, 3 }
   0xf   : > { %s311_s29 = sshll.u32 (!%p142_p9), %s469_s16, 4  ;;  %s220_s16 = scalar_lea.sflag (!%p142_p9), [#allocation3], %s162_s27 }
  0x10   : > { %s231_s5 = scalar_lea.hbm (!%p142_p9), %s562_s3, %s311_s29 }
  0x11   : > { %s234_s10 = sshll.u32 (!%p142_p9), %s231_s5, 4  ;;  %s235_s10 = int_to_ptr.hbm [resolvable:$true] %s234_s10 }
  0x12   : > { %s376_s11 = sshra.s32 (!%p142_p9), %s235_s10, 4  ;;  %s377_s11 = int_to_ptr.hbm [resolvable:$true] %s376_s11 }
  0x13   : > { %v181_v0 = vld [vmem:[%s560_s1 + $0x38] sm:$0xff]  ;;  %v180_v1 = vld [vmem:[%s560_s1 + $0x30] sm:$0xff]  ;;  %v179_v2 = vld [vmem:[%s560_s1 + $0x28] sm:$0xff]  ;;  %s570_s28 = smov (!%p166_p10, %s302_s28), 3  ;;  %vm186_vm0 = vcmask 523264   ;;  %vm216_vm1 = vcmask 261120   ;;  %p383_p0 = scmp.lt.s32.totalorder %s377_s11, %s562_s3 }
  0x14   : > { %201 = vmatpush.msra.mxu0 %v181_v0  ;;  %312 = vmatpush.msra.mxu1 %v181_v0  ;;  %v178_v3 = vld [vmem:[%s560_s1 + $0x20] sm:$0xff]  ;;  %v177_v4 = vld [vmem:[%s560_s1 + $0x18] sm:$0xff]  ;;  %s303_s8 = sshll.u32 %s570_s28, 3  ;;  %v176_v5 = vld [vmem:[%s560_s1 + $0x10] sm:$0xff]  ;;  %s301_s28 = sshll.u32 %s162_s27, 4 }
  0x15   : > { %v175_v6 = vld [vmem:[%s560_s1 + $0x8] sm:$0xff]  ;;  %s169_s24 = scalar_lea.vmem %s559_s0, %s303_s8  ;;  %v174_v7 = vld [vmem:[%s560_s1] sm:$0xff]  ;;  %s164_s8 = scalar_lea.vmem [#allocation2], %s301_s28 }
  0x16   : > { %202 = vmatpush.msra.mxu0 %v180_v1  ;;  %313 = vmatpush.msra.mxu1 %v180_v1  ;;  %v172_v8 = vld [vmem:[%s169_s24] sm:$0xff]  ;;  %v173_v9 = vld [vmem:[%s169_s24 + $0x8] sm:$0xff]  ;;  %s232_s9 = sshll.u32 %s164_s8, 4  ;;  %s378_s17 = scalar_lea.hbm %s377_s11, 16  ;;  %s233_s9 = int_to_ptr.vmem [resolvable:$true] %s232_s9 }
  0x17   : > { %v361_v10 = vld [vmem:[%s561_s2] ss:$0 sm:$0xff]  ;;  %p379_p11 = scmp.ne.s32.totalorder %s377_s11, %s378_s17  ;;  %s382_s24 = scalar_lea.hbm %s562_s3, 32 }
  0x18   : > { %203 = vmatpush.msra.mxu0 %v179_v2  ;;  %314 = vmatpush.msra.mxu1 %v179_v2  ;;  %p384_p1 = scmp.lt.s32.totalorder %s382_s24, %s378_s17 }
  0x19   : > { %p380_p12 = pnand %p379_p11, %p486_p5 }
  0x1a   : > { %204 = vmatpush.msra.mxu0 %v178_v3  ;;  %315 = vmatpush.msra.mxu1 %v178_v3  ;;  %p385_p2 = por %p384_p1, %p383_p0 }
  0x1b   : > { %p381_p13 = pneg %p380_p12 }
  0x1c   : > { %205 = vmatpush.msra.mxu0 %v177_v4  ;;  %316 = vmatpush.msra.mxu1 %v177_v4 }
  0x1d   : > { %p386_p3 = pnand %p385_p2, %p381_p13 }
  0x1e   : > { %206 = vmatpush.msra.mxu0 %v176_v5  ;;  %317 = vmatpush.msra.mxu1 %v176_v5 }
  0x20   : > { %207 = vmatpush.msra.mxu0 %v175_v6  ;;  %318 = vmatpush.msra.mxu1 %v175_v6 }
  0x22   : > { %208 = vmatpush.msra.mxu0 %v174_v7  ;;  %319 = vmatpush.msra.mxu1 %v174_v7 }
  0x23   : > { %304 = vmatmul.msk.f32.vlgmr.msra.gmra.mxu0 %vm186_vm0, %v172_v8  ;;  %305 = vmatmul.msk.f32.vlgmr.msra.gmra.mxu1 %vm186_vm0, %v173_v9 }
  0xa0   : > { %v210_v11 = vpop.f32.mrf.mxu0  ;;  %v213_v12 = vpop.f32.mrf.mxu1 }
  0xa1   : > { %v211_v13 = vadd.f32 %v361_v10, %v210_v11  ;;  %v214_v14 = vadd.f32 %v361_v10, %v213_v12 }
  0xa3   : > { %217 = vst.msk [vmem:[%s164_s8] sm:$0xff] %vm216_vm1, %v211_v13 }
  0xa4   : > { %218 = vst.msk [vmem:[%s164_s8 + $0x8] sm:$0xff] %vm216_vm1, %v214_v14 }
  0xa5   : > { %389 = shalt.err (!%p386_p3)
}
  0xa6   : > { %s426_s27 = smov 128   ;;  %s427_s28 = smov 8  }
  0xa7   : > { %320 = dma.vmem_to_hbm [thread:$0]  (%p486_p5), %s233_s9, 256, %s235_s10, %s220_s16, %s426_s27, %s426_s27, %s427_s28  }
  0xa8 PF: > { %p326_p4 = scmp.ge.s32.totalorder %s424_s15, 2  ;;  %s249_s29 = sand.u32 1, %s412_s12  }
  0xa9   : > { %s250_s30 = scalar_lea.sflag [#allocation3], %s249_s29 }
  0xaa   : > { %p323_p7 = pnand %p326_p4, %p490_p6 }
  0xac   : > { %p324_p8 = pneg %p323_p7 }
  0xae   : > { %407 = dma.done.wait (%p324_p8), %s250_s30, 256  }
  0xaf   : > { %409 = vsyncadd (%p324_p8), %s250_s30, 4294967040  ;;  %p13_p9 = scmp.ge.s32.totalorder %s473_s18, 4   ;;  %s565_s12 = smov %s416_s13 }
  0xb0   : > { %s566_s13 = smov %s420_s14  ;;  %s567_s14 = smov %s484_s21 }
  0xb1   : > { %s568_s15 = smov %s473_s18  ;;  %15 = sbr.rel (!%p13_p9) target bundleno = 3 (0x3), region = 67 }
  0xb6   :  { %256 = vsyncpa [#allocation3], 1 }
  0xb7   :  { %258 = vsyncpa [#allocation3 + $0x1], 1 }

</bundles_post_ra>
